<compile_context>
chip_gen: v5e
topology: v5e:2x2
jax: 0.10.0
libtpu: 0.0.40
codegen_flags: <defaults>
</compile_context>

<pallas_src>
import functools

import jax
import jax.numpy as jnp
from jax import lax
from jax.experimental import pallas as pl
from jax.experimental.pallas import tpu as pltpu

LANES = 128
SUBLANES = 8
ROW_ALIGN = 16          # keep non-full block row dims multiples of 16 (bf16-safe)


def _chip_config():
    """(max_block_rows, tensorcore_split) from the local chip generation."""
    kind = ""
    try:
        kind = jax.devices()[0].device_kind.lower()
    except Exception:
        pass
    if "v5 lite" in kind or "v5lite" in kind or "v5e" in kind:
        return 4096, 1      # smaller scoped-VMEM default; single TensorCore
    if "v6" in kind:
        return 8192, 1      # single TensorCore
    if "7" in kind:
        return 8192, 2      # v7x: 2 TensorCores per chip
    return 4096, 1          # unknown / older chips: conservative


def _choose_tiling(rows, max_rows, want_split):
    """Pick (block_rows, nsplit) so the grid tiles `rows` exactly whenever
    possible (no in-kernel masking, no duplicate clamped-block DMA)."""
    # Everything fits in a single block per core.
    if rows <= max_rows:
        if (want_split > 1 and rows >= ROW_ALIGN * want_split
                and rows % (ROW_ALIGN * want_split) == 0):
            return rows // want_split, want_split
        return rows, 1
    # Large input: search for an exactly-dividing block size close to the cap
    # (so per-grid-step overhead stays amortized).
    min_br = max(ROW_ALIGN, (max_rows // 8) - ((max_rows // 8) % ROW_ALIGN))
    for ns in ((want_split, 1) if want_split > 1 else (1,)):
        if rows % ns:
            continue
        per_core = rows // ns
        br = min(max_rows, per_core)
        br -= br % ROW_ALIGN
        while br >= min_br:
            if per_core % br == 0:
                return br, ns
            br -= ROW_ALIGN
    # Fall back to max-size blocks; the ragged edge / duplicate block is
    # handled by the pl.when-guarded mask in the kernel.
    return max_rows, want_split


def _dice_kernel(x_ref, t_ref, inter_ref, denom_ref, *,
                 block_rows, total_rows, inner, needs_mask, acc_rows):
    i = pl.program_id(1)

    @pl.when(i == 0)
    def _init():
        inter_ref[...] = jnp.zeros_like(inter_ref)
        denom_ref[...] = jnp.zeros_like(denom_ref)

    x = x_ref[...].astype(jnp.float32)
    t = t_ref[...].astype(jnp.float32)
    # sigmoid(x) == 0.5 * tanh(0.5 * x) + 0.5  (exact in f32): one EUP push
    # per element instead of exp + reciprocal.
    s = 0.5 * jnp.tanh(0.5 * x) + 0.5

    def _reduce(v):
        # (block_rows, 128) -> (acc_rows, 128): sum over leading vreg groups
        # only (pure VPU, no cross-lane work).  acc_rows = 32 gives 4
        # independent accumulation chains for VALU ILP.
        return jnp.sum(v.reshape(-1, acc_rows, LANES), axis=0)

    def _accumulate(sv, tv):
        inter_ref[0] += _reduce(sv * tv)
        denom_ref[0] += _reduce(sv + tv)

    if not needs_mask:
        _accumulate(s, t)
    else:
        c = pl.program_id(0)
        block_id = c * inner + i
        is_interior = (block_id + 1) * block_rows <= total_rows

        @pl.when(is_interior)
        def _full():
            _accumulate(s, t)

        @pl.when(jnp.logical_not(is_interior))
        def _edge():
            # Only the ragged last block / clamped duplicate block pays for
            # the iota + compare + selects.
            row_ids = block_id * block_rows + lax.broadcasted_iota(
                jnp.int32, (block_rows, LANES), 0)
            valid = row_ids < total_rows
            _accumulate(jnp.where(valid, s, 0.0), jnp.where(valid, t, 0.0))


def _partial_sums_jax(x, t):
    """intersection-sum and (sum(s)+sum(t)) for a small tail, in plain JAX."""
    s = jax.nn.sigmoid(x.astype(jnp.float32))
    tf = t.astype(jnp.float32)
    return jnp.sum(s * tf), jnp.sum(s) + jnp.sum(tf)


def dice_loss(inputs, targets, smooth=1.0):
    """Pallas TPU implementation of DiceLoss.forward. Returns an f32 scalar."""
    x = jnp.ravel(inputs)
    t = jnp.ravel(targets)
    n = x.shape[0]

    main = n - (n % LANES)
    smooth = jnp.float32(smooth)

    if main == 0:
        # Tiny input: not worth a kernel launch.
        inter, denom = _partial_sums_jax(x, t)
        return 1.0 - (2.0 * inter + smooth) / (denom + smooth)

    inter_tail = jnp.float32(0.0)
    denom_tail = jnp.float32(0.0)
    if main < n:
        # Ragged tail (< 128 elements): reduce in plain JAX instead of paying
        # a padded full-array copy.  (The prefix slice is a no-op when
        # n % 128 == 0, which is the common segmentation case.)
        inter_tail, denom_tail = _partial_sums_jax(x[main:], t[main:])
        x = x[:main]
        t = t[:main]

    rows = main // LANES
    x2 = x.reshape(rows, LANES)
    t2 = t.reshape(rows, LANES)

    max_rows, want_split = _chip_config()
    block_rows, nsplit = _choose_tiling(rows, max_rows, want_split)
    nblocks = pl.cdiv(rows, block_rows)
    inner = pl.cdiv(nblocks, nsplit)
    needs_mask = (nsplit * inner * block_rows) != rows

    if block_rows % 32 == 0:
        acc_rows = 32               # 4 vreg rows of independent accumulators
    elif block_rows % SUBLANES == 0:
        acc_rows = SUBLANES
    else:
        acc_rows = block_rows       # tiny single-block (full-dim) case

    def in_index_map(c, i):
        b = c * inner + i
        # Clamp so duplicate trailing iterations (grid rounding) never DMA
        # past the array; their contribution is zeroed by the edge mask.
        return (jnp.minimum(b, nblocks - 1), 0)

    kernel = functools.partial(
        _dice_kernel,
        block_rows=block_rows,
        total_rows=rows,
        inner=inner,
        needs_mask=needs_mask,
        acc_rows=acc_rows,
    )

    acc_shape = jax.ShapeDtypeStruct((nsplit, acc_rows, LANES), jnp.float32)
    acc_spec = pl.BlockSpec((1, acc_rows, LANES), lambda c, i: (c, 0, 0))

    itemsize_x = jnp.dtype(x2.dtype).itemsize
    itemsize_t = jnp.dtype(t2.dtype).itemsize
    block_bytes = block_rows * LANES * (itemsize_x + itemsize_t)
    # 2 inputs x 2 pipeline buffers + small accumulators + headroom.
    vmem_limit = int(min(max(2 * block_bytes + (8 << 20), 32 << 20), 96 << 20))
    bytes_accessed = (x2.size * itemsize_x + t2.size * itemsize_t
                      + 2 * nsplit * acc_rows * LANES * 4)

    partial_inter, partial_denom = pl.pallas_call(
        kernel,
        out_shape=(acc_shape, acc_shape),
        grid_spec=pltpu.PrefetchScalarGridSpec(
            num_scalar_prefetch=0,
            grid=(nsplit, inner),
            in_specs=[
                pl.BlockSpec((block_rows, LANES), in_index_map),
                pl.BlockSpec((block_rows, LANES), in_index_map),
            ],
            out_specs=[acc_spec, acc_spec],
        ),
        compiler_params=pltpu.CompilerParams(
            dimension_semantics=("parallel", "arbitrary"),
            vmem_limit_bytes=vmem_limit,
        ),
        cost_estimate=pl.CostEstimate(
            flops=6 * main,
            transcendentals=main,
            bytes_accessed=bytes_accessed,
        ),
    )(x2, t2)

    # Tiny epilogue in JAX: single cross-lane/sublane/core reduction + dice.
    inter = jnp.sum(partial_inter) + inter_tail
    denom = jnp.sum(partial_denom) + denom_tail
    dice = (2.0 * inter + smooth) / (denom + smooth)
    return 1.0 - dice


def dice_loss_ref(inputs, targets, smooth=1.0):
    s = jax.nn.sigmoid(inputs.astype(jnp.float32)).ravel()
    t = targets.astype(jnp.float32).ravel()
    inter = jnp.sum(s * t)
    dice = (2.0 * inter + smooth) / (jnp.sum(s) + jnp.sum(t) + smooth)
    return 1.0 - dice


if __name__ == "__main__":
    key = jax.random.PRNGKey(0)
    k1, k2, k3, k4 = jax.random.split(key, 4)

    # NCHW segmentation-style logits / binary masks (128-aligned case).
    x = jax.random.normal(k1, (2, 4, 16, 16), dtype=jnp.float32)
    tgt = (jax.random.uniform(k2, (2, 4, 16, 16)) > 0.5).astype(jnp.float32)
    loss = jax.block_until_ready(dice_loss(x, tgt, smooth=1.0))
    ref = jax.block_until_ready(dice_loss_ref(x, tgt, smooth=1.0))
    assert jnp.allclose(loss, ref, rtol=1e-5, atol=1e-5), (loss, ref)

    # Ragged size (exercises the plain-JAX tail path, no padding copy of note).
    x_r = jax.random.normal(k3, (3, 5, 17, 19), dtype=jnp.float32)
    t_r = (jax.random.uniform(k4, (3, 5, 17, 19)) > 0.5).astype(jnp.float32)
    loss_r = jax.block_until_ready(dice_loss(x_r, t_r, smooth=1.0))
    ref_r = jax.block_until_ready(dice_loss_ref(x_r, t_r, smooth=1.0))
    assert jnp.allclose(loss_r, ref_r, rtol=1e-5, atol=1e-5), (loss_r, ref_r)

    print("KERNEL_OK")
</pallas_src>

<mosaic_0001>
module attributes {stable_mosaic.version = 11 : i64} {
  func.func @_dice_kernel(%arg0: i32, %arg1: i32, %arg2: memref<16x128xf32, #tpu.memory_space<vmem>>, %arg3: memref<16x128xf32, #tpu.memory_space<vmem>>, %arg4: memref<1x8x128xf32, #tpu.memory_space<vmem>>, %arg5: memref<1x8x128xf32, #tpu.memory_space<vmem>>) attributes {dimension_semantics = [#tpu.dimension_semantics<parallel>, #tpu.dimension_semantics<arbitrary>], iteration_bounds = array<i64: 1, 1>, scalar_prefetch = 0 : i64, scratch_operands = 0 : i64, tpu.core_type = #tpu.core_type<tc>, window_params = [{transform_indices = @transform_0, window_bounds = array<i64: 16, 128>}, {transform_indices = @transform_1, window_bounds = array<i64: 16, 128>}, {transform_indices = @transform_2, window_bounds = array<i64: 1, 8, 128>}, {transform_indices = @transform_3, window_bounds = array<i64: 1, 8, 128>}]} {
    %c0_i32 = arith.constant 0 : i32
    %0 = arith.cmpi eq, %arg1, %c0_i32 : i32
    %1 = arith.extui %0 : i1 to i32
    %c0_i32_0 = arith.constant 0 : i32
    %2 = arith.cmpi ne, %1, %c0_i32_0 : i32
    scf.if %2 {
      %cst_20 = arith.constant 0.000000e+00 : f32
      %30 = vector.broadcast %cst_20 : f32 to vector<1x8x128xf32>
      %c0_21 = arith.constant 0 : index
      %c0_22 = arith.constant 0 : index
      %c0_23 = arith.constant 0 : index
      %31 = vector.load %arg4[%c0_21, %c0_22, %c0_23] : memref<1x8x128xf32, #tpu.memory_space<vmem>>, vector<1x8x128xf32>
      tpu.vector_store %arg4[%c0_21, %c0_22, %c0_23], %30 {strides = array<i32>} : memref<1x8x128xf32, #tpu.memory_space<vmem>>, vector<1x8x128xf32>,
      %cst_24 = arith.constant 0.000000e+00 : f32
      %32 = vector.broadcast %cst_24 : f32 to vector<1x8x128xf32>
      %c0_25 = arith.constant 0 : index
      %c0_26 = arith.constant 0 : index
      %c0_27 = arith.constant 0 : index
      %33 = vector.load %arg5[%c0_25, %c0_26, %c0_27] : memref<1x8x128xf32, #tpu.memory_space<vmem>>, vector<1x8x128xf32>
      tpu.vector_store %arg5[%c0_25, %c0_26, %c0_27], %32 {strides = array<i32>} : memref<1x8x128xf32, #tpu.memory_space<vmem>>, vector<1x8x128xf32>,
    } else {
    }
    %c0 = arith.constant 0 : index
    %c0_1 = arith.constant 0 : index
    %3 = vector.load %arg2[%c0, %c0_1] : memref<16x128xf32, #tpu.memory_space<vmem>>, vector<16x128xf32>
    %c0_2 = arith.constant 0 : index
    %c0_3 = arith.constant 0 : index
    %4 = vector.load %arg3[%c0_2, %c0_3] : memref<16x128xf32, #tpu.memory_space<vmem>>, vector<16x128xf32>
    %cst = arith.constant 5.000000e-01 : f32
    %5 = vector.broadcast %cst : f32 to vector<16x128xf32>
    %6 = arith.mulf %5, %3 : vector<16x128xf32>
    %7 = math.tanh %6 : vector<16x128xf32>
    %cst_4 = arith.constant 5.000000e-01 : f32
    %8 = vector.broadcast %cst_4 : f32 to vector<16x128xf32>
    %9 = arith.mulf %8, %7 : vector<16x128xf32>
    %cst_5 = arith.constant 5.000000e-01 : f32
    %10 = vector.broadcast %cst_5 : f32 to vector<16x128xf32>
    %11 = arith.addf %9, %10 : vector<16x128xf32>
    %c0_6 = arith.constant 0 : index
    %c0_7 = arith.constant 0 : index
    %c0_8 = arith.constant 0 : index
    %12 = vector.load %arg4[%c0_6, %c0_7, %c0_8] : memref<1x8x128xf32, #tpu.memory_space<vmem>>, vector<1x8x128xf32>
    %13 = vector.shape_cast %12 : vector<1x8x128xf32> to vector<8x128xf32>
    %14 = arith.mulf %11, %4 : vector<16x128xf32>
    %15 = vector.shape_cast %14 : vector<16x128xf32> to vector<2x8x128xf32>
    %cst_9 = arith.constant dense<0.000000e+00> : vector<8x128xf32>
    %16 = vector.multi_reduction <add>, %15, %cst_9 [0] : vector<2x8x128xf32> to vector<8x128xf32>
    %17 = arith.addf %13, %16 : vector<8x128xf32>
    %c0_10 = arith.constant 0 : index
    %c0_11 = arith.constant 0 : index
    %c0_12 = arith.constant 0 : index
    %18 = vector.load %arg4[%c0_10, %c0_11, %c0_12] : memref<1x8x128xf32, #tpu.memory_space<vmem>>, vector<1x8x128xf32>
    %19 = vector.shape_cast %18 : vector<1x8x128xf32> to vector<8x128xf32>
    %20 = vector.shape_cast %17 : vector<8x128xf32> to vector<1x8x128xf32>
    tpu.vector_store %arg4[%c0_10, %c0_11, %c0_12], %20 {strides = array<i32>} : memref<1x8x128xf32, #tpu.memory_space<vmem>>, vector<1x8x128xf32>,
    %c0_13 = arith.constant 0 : index
    %c0_14 = arith.constant 0 : index
    %c0_15 = arith.constant 0 : index
    %21 = vector.load %arg5[%c0_13, %c0_14, %c0_15] : memref<1x8x128xf32, #tpu.memory_space<vmem>>, vector<1x8x128xf32>
    %22 = vector.shape_cast %21 : vector<1x8x128xf32> to vector<8x128xf32>
    %23 = arith.addf %11, %4 : vector<16x128xf32>
    %24 = vector.shape_cast %23 : vector<16x128xf32> to vector<2x8x128xf32>
    %cst_16 = arith.constant dense<0.000000e+00> : vector<8x128xf32>
    %25 = vector.multi_reduction <add>, %24, %cst_16 [0] : vector<2x8x128xf32> to vector<8x128xf32>
    %26 = arith.addf %22, %25 : vector<8x128xf32>
    %c0_17 = arith.constant 0 : index
    %c0_18 = arith.constant 0 : index
    %c0_19 = arith.constant 0 : index
    %27 = vector.load %arg5[%c0_17, %c0_18, %c0_19] : memref<1x8x128xf32, #tpu.memory_space<vmem>>, vector<1x8x128xf32>
    %28 = vector.shape_cast %27 : vector<1x8x128xf32> to vector<8x128xf32>
    %29 = vector.shape_cast %26 : vector<8x128xf32> to vector<1x8x128xf32>
    tpu.vector_store %arg5[%c0_17, %c0_18, %c0_19], %29 {strides = array<i32>} : memref<1x8x128xf32, #tpu.memory_space<vmem>>, vector<1x8x128xf32>,
    return
  }
  func.func @transform_0(%arg0: i32, %arg1: i32) -> (i32, i32) {
    %c1_i32 = arith.constant 1 : i32
    %0 = arith.muli %arg0, %c1_i32 : i32
    %1 = arith.addi %0, %arg1 : i32
    %c0_i32 = arith.constant 0 : i32
    %2 = arith.minsi %1, %c0_i32 : i32
    %c0_i32_0 = arith.constant 0 : i32
    %c0_i32_1 = arith.constant 0 : i32
    return %2, %c0_i32_0 : i32, i32
  }
  func.func @transform_1(%arg0: i32, %arg1: i32) -> (i32, i32) {
    %c1_i32 = arith.constant 1 : i32
    %0 = arith.muli %arg0, %c1_i32 : i32
    %1 = arith.addi %0, %arg1 : i32
    %c0_i32 = arith.constant 0 : i32
    %2 = arith.minsi %1, %c0_i32 : i32
    %c0_i32_0 = arith.constant 0 : i32
    %c0_i32_1 = arith.constant 0 : i32
    return %2, %c0_i32_0 : i32, i32
  }
  func.func @transform_2(%arg0: i32, %arg1: i32) -> (i32, i32, i32) {
    %c0_i32 = arith.constant 0 : i32
    %c0_i32_0 = arith.constant 0 : i32
    %c0_i32_1 = arith.constant 0 : i32
    return %arg0, %c0_i32, %c0_i32_0 : i32, i32, i32
  }
  func.func @transform_3(%arg0: i32, %arg1: i32) -> (i32, i32, i32) {
    %c0_i32 = arith.constant 0 : i32
    %c0_i32_0 = arith.constant 0 : i32
    %c0_i32_1 = arith.constant 0 : i32
    return %arg0, %c0_i32, %c0_i32_0 : i32, i32, i32
  }
}

</mosaic_0001>

<bundles_post_ra>
// kernel: tpu_custom_call.1
= control target key start
LH: loop header
LB: loop body
LE: loop exit
PB: predicated region body
PF: predicated region fallthrough
CT: control target
= control target key end

     0   :  { %9 = vsyncpa [#allocation3], 0  ;;  %s288_s0 = inlined_call_operand.hbm [shape: f32[16,128], index: 0, kind: input, shape index: {}]   ;;  %s289_s1 = inlined_call_operand.hbm [shape: f32[16,128], index: 1, kind: input, shape index: {}]   ;;  %s290_s2 = inlined_call_operand.hbm [shape: f32[1,8,128], index: 2, kind: output, shape index: {0}]   ;;  %s291_s3 = inlined_call_operand.hbm [shape: f32[1,8,128], index: 3, kind: output, shape index: {1}]  }
   0x1   :  { %10 = vsyncpa [#allocation6], 0 }
   0x2   :  { %11 = vsyncpa [#allocation4], 0 }
   0x3   :  { %12 = vsyncpa [#allocation9], 0  ;;  %s23_s14 = sshll.u32 %s288_s0, 4  ;;  %s250_s15 = smov [#allocation2]   ;;  %s24_s14 = int_to_ptr.hbm [resolvable:$true] %s23_s14 }
   0x4   :  { %s25_s16 = sshll.u32 %s250_s15, 4  ;;  %s42_s19 = sshll.u32 %s289_s1, 4  ;;  %s26_s16 = int_to_ptr.vmem [resolvable:$true] %s25_s16  ;;  %s43_s19 = int_to_ptr.hbm [resolvable:$true] %s42_s19 }
   0x5   :  { %s251_s20 = smov 128   ;;  %s252_s21 = smov 8  }
   0x6   :  { %31 = dma.hbm_to_vmem [thread:$0]  %s24_s14, 256, %s26_s16, [#allocation3], %s251_s20, %s251_s20, %s252_s21  }
   0x7   :  { %s253_s22 = smov [#allocation5]  }
   0x8   :  { %s44_s23 = sshll.u32 %s253_s22, 4  ;;  %s45_s23 = int_to_ptr.vmem [resolvable:$true] %s44_s23 }
   0x9   :  { %50 = dma.hbm_to_vmem [thread:$0]  %s43_s19, 256, %s45_s23, [#allocation6], %s251_s20, %s251_s20, %s252_s21  }
   0xa   :  { %242 = dma.done.wait [#allocation3], 256  }
   0xb   :  { %243 = vsyncadd [#allocation3], 4294967040 }
   0xc   :  { %244 = dma.done.wait [#allocation6], 256  }
   0xd   :  { %245 = vsyncadd [#allocation6], 4294967040  ;;  %v73_v0 = vld [vmem:[#allocation2] sm:$0xff]  ;;  %v74_v1 = vld [vmem:[#allocation2 + $0x8] sm:$0xff]  ;;  %s254_s0 = smov [#allocation7]   ;;  %s104_s26 = sshll.u32 %s290_s2, 4  ;;  %s105_s26 = int_to_ptr.hbm [resolvable:$true] %s104_s26 }
   0xe   :  { %v77_v2 = vmul.f32 0.5, %v73_v0  ;;  %v78_v3 = vmul.f32 0.5, %v74_v1  ;;  %v75_v7 = vld [vmem:[#allocation5] sm:$0xff]  ;;  %v76_v9 = vld [vmem:[#allocation5 + $0x8] sm:$0xff]  ;;  %s102_s1 = sshll.u32 %s254_s0, 4  ;;  %s255_s27 = smov [#allocation8]   ;;  %s103_s1 = int_to_ptr.vmem [resolvable:$true] %s102_s1 }
   0xf   :  { %s113_s28 = sshll.u32 %s255_s27, 4  ;;  %s115_s4 = sshll.u32 %s291_s3, 4  ;;  %s114_s28 = int_to_ptr.vmem [resolvable:$true] %s113_s28  ;;  %s116_s4 = int_to_ptr.hbm [resolvable:$true] %s115_s4 }
  0x10   :  { %142 = vtanh.f32 %v77_v2 }
  0x11   :  { %144 = vtanh.f32 %v78_v3 }
  0x16   :  { %v143_v4 = vpop.eup %142 }
  0x17   :  { %v145_v5 = vpop.eup %144  ;;  %v81_v6 = vmul.f32 0.5, %v143_v4 }
  0x18   :  { %v82_v8 = vmul.f32 0.5, %v145_v5 }
  0x19   :  { %v83_v10 = vadd.f32 0.5, %v81_v6 }
  0x1a   :  { %v84_v11 = vadd.f32 0.5, %v82_v8 }
  0x1b   :  { %v86_v12 = vmul.f32 %v83_v10, %v75_v7  ;;  %v92_v13 = vadd.f32 %v83_v10, %v75_v7 }
  0x1c   :  { %v87_v14 = vmul.f32 %v84_v11, %v76_v9  ;;  %v93_v15 = vadd.f32 %v84_v11, %v76_v9 }
  0x1e   :  { %v88_v16 = vadd.f32 %v87_v14, %v86_v12  ;;  %v94_v17 = vadd.f32 %v93_v15, %v92_v13 }
  0x20   :  { %90 = vst [vmem:[#allocation7] sm:$0xff] %v88_v16 }
  0x21   :  { %96 = vst [vmem:[#allocation8] sm:$0xff] %v94_v17  ;;  %107 = dma.vmem_to_hbm [thread:$0]  %s103_s1, 128, %s105_s26, [#allocation4]  }
  0x22   :  { %118 = dma.vmem_to_hbm [thread:$0]  %s114_s28, 128, %s116_s4, [#allocation9]  }
  0x23   :  { %246 = dma.done.wait [#allocation4], 128  }
  0x24   :  { %247 = vsyncadd [#allocation4], 4294967168 }
  0x25   :  { %248 = dma.done.wait [#allocation9], 128  }
  0x26   :  { %249 = vsyncadd [#allocation9], 4294967168 }
  0x27   :  { %127 = vsyncpa [#allocation3], 1 }
  0x28   :  { %128 = vsyncpa [#allocation6], 1 }
  0x29   :  { %129 = vsyncpa [#allocation4], 1 }
  0x2a   :  { %130 = vsyncpa [#allocation9], 1 }

</bundles_post_ra>
